<compile_context>
chip_gen: v5e
topology: v5e:2x2
jax: 0.10.0
libtpu: 0.0.40
codegen_flags: <defaults>
</compile_context>

<pallas_src>
import functools

import jax
import jax.numpy as jnp
from jax.experimental import pallas as pl
from jax.experimental.pallas import tpu as pltpu

IN_DIM = 7
H1 = 512
H2 = 128
# ./data/prepositions.txt is unavailable; pick a deterministic synthetic size.
OUT_DIM = 30  # TODO(synk): real out_dim comes from len(prepositions) in the data file.


def _round_up(n, m):
    return ((n + m - 1) // m) * m


OUT_PAD = _round_up(OUT_DIM, 32)  # lane-padded output width; zero cols sliced off


def mlp2_kernel(x_ref, w1_ref, b1_ref, w2_ref, b2_ref, w3_ref, b3_ref, o_ref):
    # One batch tile per grid step; weights/biases are resident full blocks.
    x = x_ref[...]                                                          # bf16 [TB, 7]
    h1 = jnp.dot(x, w1_ref[...], preferred_element_type=jnp.float32)       # [TB, 512] f32
    h1 = jnp.maximum(h1 + b1_ref[...], 0.0).astype(jnp.bfloat16)           # fc1 + relu -> bf16
    # dropout1: identity (eval mode)
    h2 = jnp.dot(h1, w2_ref[...], preferred_element_type=jnp.float32)      # [TB, 128] f32
    h2 = jnp.maximum(h2 + b2_ref[...], 0.0).astype(jnp.bfloat16)           # fc2 + relu -> bf16
    # dropout2: identity (eval mode)
    logits = jnp.dot(h2, w3_ref[...], preferred_element_type=jnp.float32)  # [TB, OUT_PAD] f32
    o_ref[...] = (logits + b3_ref[...]).astype(o_ref.dtype)                # fc3, bf16 store


def _vmem_limit_bytes():
    # Generation-gate the scoped VMEM limit: ~96 MiB on 128-MiB parts
    # (v5e/v6e), 48 MiB on v7x (64 MiB physical). Safe fallback = v7x value.
    try:
        cap = int(pltpu.get_tpu_info().vmem_capacity_bytes)
        return max(min(cap - (16 << 20), 96 << 20), 48 << 20)
    except Exception:
        return 48 << 20


def _choose_tiling(B, tile_b):
    """Adaptive batch tiling: TB rows/step, >=2 grid steps when B allows it."""
    if B <= 8:
        return 8, 8  # TB, Bp
    min_steps = 2 if B >= 16 else 1              # >=2 steps -> both TCs on v7x
    n_steps = max(pl.cdiv(B, tile_b), min_steps)
    TB = _round_up(pl.cdiv(B, n_steps), 8)       # sublane-aligned tile
    Bp = _round_up(B, TB)                        # minimal padded batch
    return TB, Bp


@functools.partial(jax.jit, static_argnames=("tile_b",))
def mlp2_forward(x, params, tile_b=4096):
    """x: [B, ...] float32 -> logits [B, OUT_DIM] float32."""
    B = x.shape[0]
    x2d = x.reshape(B, -1)  # nn.Flatten()
    assert x2d.shape[1] == IN_DIM
    x2d = x2d.astype(jnp.bfloat16)  # halve x DMA + its lane-padded VMEM tile

    w1, b1, w2, b2, w3, b3 = params

    # Zero-pad fc3 to the lane-padded OUT_PAD width (math exact; extra columns
    # are zero and sliced off below).
    w3p = jnp.pad(w3, ((0, 0), (0, OUT_PAD - OUT_DIM)))
    b3p = jnp.pad(b3, ((0, 0), (0, OUT_PAD - OUT_DIM)))

    # bf16 matmul operands; biases stay f32 (bias-add/ReLU on the VPU in f32).
    w1b = w1.astype(jnp.bfloat16)
    w2b = w2.astype(jnp.bfloat16)
    w3b = w3p.astype(jnp.bfloat16)

    TB, Bp = _choose_tiling(B, tile_b)
    if Bp != B:
        x2d = jnp.pad(x2d, ((0, Bp - B), (0, 0)))
    grid = (Bp // TB,)

    batch_spec = lambda shape: pl.BlockSpec(shape, lambda i: (i, 0))
    resident = lambda shape: pl.BlockSpec(shape, lambda i: (0, 0))

    flops = 2 * Bp * (IN_DIM * H1 + H1 * H2 + H2 * OUT_PAD)
    bytes_accessed = (
        2 * (IN_DIM * H1 + H1 * H2 + H2 * OUT_PAD)        # bf16 weights
        + 4 * (H1 + H2 + OUT_PAD)                         # f32 biases
        + 2 * Bp * (IN_DIM + OUT_PAD)                     # bf16 activations in/out
    )

    out = pl.pallas_call(
        mlp2_kernel,
        out_shape=jax.ShapeDtypeStruct((Bp, OUT_PAD), jnp.bfloat16),
        grid=grid,
        in_specs=[
            batch_spec((TB, IN_DIM)),
            resident((IN_DIM, H1)), resident((1, H1)),
            resident((H1, H2)),     resident((1, H2)),
            resident((H2, OUT_PAD)), resident((1, OUT_PAD)),
        ],
        out_specs=batch_spec((TB, OUT_PAD)),
        compiler_params=pltpu.CompilerParams(
            dimension_semantics=("parallel",),   # shard batch across TCs on v7x
            vmem_limit_bytes=_vmem_limit_bytes(),
        ),
        cost_estimate=pl.CostEstimate(
            flops=flops, transcendentals=0, bytes_accessed=bytes_accessed),
    )(x2d, w1b, b1, w2b, b2, w3b, b3p)

    # Padded rows (zero inputs) get bias-only logits; the [:B] slice removes them.
    return out[:B, :OUT_DIM].astype(jnp.float32)


def init_params(key):
    """Deterministic synthetic parameters (PyTorch-Linear-like uniform init)."""
    ks = jax.random.split(key, 6)

    def linear(kw, kb, fan_in, fan_out):
        bound = 1.0 / jnp.sqrt(fan_in)
        # stored as [in, out] (transposed vs. torch's [out, in])
        w = jax.random.uniform(kw, (fan_in, fan_out), jnp.float32, -bound, bound)
        b = jax.random.uniform(kb, (1, fan_out), jnp.float32, -bound, bound)
        return w, b

    w1, b1 = linear(ks[0], ks[1], IN_DIM, H1)
    w2, b2 = linear(ks[2], ks[3], H1, H2)
    w3, b3 = linear(ks[4], ks[5], H2, OUT_DIM)
    return (w1, b1, w2, b2, w3, b3)


def _reference(x, params):
    """Pure-JAX reference with the same bf16-operand / f32-accumulate / bf16-out math."""
    w1, b1, w2, b2, w3, b3 = params
    bf = jnp.bfloat16
    h1 = jnp.maximum(
        jnp.dot(x.astype(bf), w1.astype(bf), preferred_element_type=jnp.float32) + b1,
        0.0).astype(bf)
    h2 = jnp.maximum(
        jnp.dot(h1, w2.astype(bf), preferred_element_type=jnp.float32) + b2,
        0.0).astype(bf)
    ref = jnp.dot(h2, w3.astype(bf), preferred_element_type=jnp.float32) + b3
    return ref.astype(bf).astype(jnp.float32)  # match the kernel's bf16 output store


if __name__ == "__main__":
    key = jax.random.PRNGKey(0)
    k_in, k_in2, k_par = jax.random.split(key, 3)
    params = init_params(k_par)

    # Small single-tile case.
    B = 8
    x = jax.random.normal(k_in, (B, IN_DIM), jnp.float32)  # input: [batch, 7]
    logits = mlp2_forward(x, params)
    jax.block_until_ready(logits)
    assert logits.shape == (B, OUT_DIM)
    ref = _reference(x, params)
    assert jnp.allclose(logits, ref, atol=2e-2, rtol=2e-2), (
        float(jnp.max(jnp.abs(logits - ref))))

    # Ragged, multi-step case (exercises adaptive tiling + >=2 grid steps).
    B2 = 300
    x2 = jax.random.normal(k_in2, (B2, IN_DIM), jnp.float32)
    logits2 = mlp2_forward(x2, params)
    jax.block_until_ready(logits2)
    assert logits2.shape == (B2, OUT_DIM)
    ref2 = _reference(x2, params)
    assert jnp.allclose(logits2, ref2, atol=2e-2, rtol=2e-2), (
        float(jnp.max(jnp.abs(logits2 - ref2))))

    print("KERNEL_OK")
</pallas_src>

<mosaic_0001>
module attributes {stable_mosaic.version = 11 : i64} {
  func.func @mlp2_kernel(%arg0: i32, %arg1: memref<8x7xbf16, #tpu.memory_space<vmem>>, %arg2: memref<7x512xbf16, #tpu.memory_space<vmem>>, %arg3: memref<1x512xf32, #tpu.memory_space<vmem>>, %arg4: memref<512x128xbf16, #tpu.memory_space<vmem>>, %arg5: memref<1x128xf32, #tpu.memory_space<vmem>>, %arg6: memref<128x32xbf16, #tpu.memory_space<vmem>>, %arg7: memref<1x32xf32, #tpu.memory_space<vmem>>, %arg8: memref<8x32xbf16, #tpu.memory_space<vmem>>) attributes {dimension_semantics = [#tpu.dimension_semantics<parallel>], iteration_bounds = array<i64: 1>, scalar_prefetch = 0 : i64, scratch_operands = 0 : i64, tpu.core_type = #tpu.core_type<tc>, window_params = [{transform_indices = @transform_0, window_bounds = array<i64: 8, 7>}, {pipeline_mode = #tpu.pipeline_mode<synchronous>, transform_indices = @transform_1, window_bounds = array<i64: 7, 512>}, {pipeline_mode = #tpu.pipeline_mode<synchronous>, transform_indices = @transform_2, window_bounds = array<i64: 1, 512>}, {pipeline_mode = #tpu.pipeline_mode<synchronous>, transform_indices = @transform_3, window_bounds = array<i64: 512, 128>}, {pipeline_mode = #tpu.pipeline_mode<synchronous>, transform_indices = @transform_4, window_bounds = array<i64: 1, 128>}, {pipeline_mode = #tpu.pipeline_mode<synchronous>, transform_indices = @transform_5, window_bounds = array<i64: 128, 32>}, {pipeline_mode = #tpu.pipeline_mode<synchronous>, transform_indices = @transform_6, window_bounds = array<i64: 1, 32>}, {transform_indices = @transform_7, window_bounds = array<i64: 8, 32>}]} {
    %c0 = arith.constant 0 : index
    %c0_0 = arith.constant 0 : index
    %0 = vector.load %arg1[%c0, %c0_0] : memref<8x7xbf16, #tpu.memory_space<vmem>>, vector<8x7xbf16>
    %c0_1 = arith.constant 0 : index
    %c0_2 = arith.constant 0 : index
    %1 = vector.load %arg2[%c0_1, %c0_2] : memref<7x512xbf16, #tpu.memory_space<vmem>>, vector<7x512xbf16>
    %cst = arith.constant dense<0.000000e+00> : vector<8x512xf32>
    %2 = tpu.matmul %0, %1, %cst {dimension_numbers = #tpu.dot_dimension_numbers<[1], [0], [0], [1], [0, 0, 1, 1], [], []>} : vector<8x7xbf16>, vector<7x512xbf16>, vector<8x512xf32> -> vector<8x512xf32>
    %c0_3 = arith.constant 0 : index
    %c0_4 = arith.constant 0 : index
    %3 = vector.load %arg3[%c0_3, %c0_4] : memref<1x512xf32, #tpu.memory_space<vmem>>, vector<1x512xf32>
    %4 = vector.broadcast %3 : vector<1x512xf32> to vector<8x512xf32>
    %5 = arith.addf %2, %4 : vector<8x512xf32>
    %cst_5 = arith.constant 0.000000e+00 : f32
    %6 = vector.broadcast %cst_5 : f32 to vector<8x512xf32>
    %7 = arith.maximumf %5, %6 : vector<8x512xf32>
    %8 = arith.truncf %7 : vector<8x512xf32> to vector<8x512xbf16>
    %c0_6 = arith.constant 0 : index
    %c0_7 = arith.constant 0 : index
    %9 = vector.load %arg4[%c0_6, %c0_7] : memref<512x128xbf16, #tpu.memory_space<vmem>>, vector<512x128xbf16>
    %cst_8 = arith.constant dense<0.000000e+00> : vector<8x128xf32>
    %10 = tpu.matmul %8, %9, %cst_8 {dimension_numbers = #tpu.dot_dimension_numbers<[1], [0], [0], [1], [0, 0, 1, 1], [], []>} : vector<8x512xbf16>, vector<512x128xbf16>, vector<8x128xf32> -> vector<8x128xf32>
    %c0_9 = arith.constant 0 : index
    %c0_10 = arith.constant 0 : index
    %11 = vector.load %arg5[%c0_9, %c0_10] : memref<1x128xf32, #tpu.memory_space<vmem>>, vector<1x128xf32>
    %12 = vector.broadcast %11 : vector<1x128xf32> to vector<8x128xf32>
    %13 = arith.addf %10, %12 : vector<8x128xf32>
    %cst_11 = arith.constant 0.000000e+00 : f32
    %14 = vector.broadcast %cst_11 : f32 to vector<8x128xf32>
    %15 = arith.maximumf %13, %14 : vector<8x128xf32>
    %16 = arith.truncf %15 : vector<8x128xf32> to vector<8x128xbf16>
    %c0_12 = arith.constant 0 : index
    %c0_13 = arith.constant 0 : index
    %17 = vector.load %arg6[%c0_12, %c0_13] : memref<128x32xbf16, #tpu.memory_space<vmem>>, vector<128x32xbf16>
    %cst_14 = arith.constant dense<0.000000e+00> : vector<8x32xf32>
    %18 = tpu.matmul %16, %17, %cst_14 {dimension_numbers = #tpu.dot_dimension_numbers<[1], [0], [0], [1], [0, 0, 1, 1], [], []>} : vector<8x128xbf16>, vector<128x32xbf16>, vector<8x32xf32> -> vector<8x32xf32>
    %c0_15 = arith.constant 0 : index
    %c0_16 = arith.constant 0 : index
    %19 = vector.load %arg7[%c0_15, %c0_16] : memref<1x32xf32, #tpu.memory_space<vmem>>, vector<1x32xf32>
    %20 = vector.broadcast %19 : vector<1x32xf32> to vector<8x32xf32>
    %21 = arith.addf %18, %20 : vector<8x32xf32>
    %22 = arith.truncf %21 : vector<8x32xf32> to vector<8x32xbf16>
    %c0_17 = arith.constant 0 : index
    %c0_18 = arith.constant 0 : index
    %23 = vector.load %arg8[%c0_17, %c0_18] : memref<8x32xbf16, #tpu.memory_space<vmem>>, vector<8x32xbf16>
    tpu.vector_store %arg8[%c0_17, %c0_18], %22 {strides = array<i32>} : memref<8x32xbf16, #tpu.memory_space<vmem>>, vector<8x32xbf16>,
    return
  }
  func.func @transform_0(%arg0: i32) -> (i32, i32) {
    %c0_i32 = arith.constant 0 : i32
    %c0_i32_0 = arith.constant 0 : i32
    return %arg0, %c0_i32 : i32, i32
  }
  func.func @transform_1(%arg0: i32) -> (i32, i32) {
    %c0_i32 = arith.constant 0 : i32
    %c0_i32_0 = arith.constant 0 : i32
    %c0_i32_1 = arith.constant 0 : i32
    return %c0_i32, %c0_i32_0 : i32, i32
  }
  func.func @transform_2(%arg0: i32) -> (i32, i32) {
    %c0_i32 = arith.constant 0 : i32
    %c0_i32_0 = arith.constant 0 : i32
    %c0_i32_1 = arith.constant 0 : i32
    return %c0_i32, %c0_i32_0 : i32, i32
  }
  func.func @transform_3(%arg0: i32) -> (i32, i32) {
    %c0_i32 = arith.constant 0 : i32
    %c0_i32_0 = arith.constant 0 : i32
    %c0_i32_1 = arith.constant 0 : i32
    return %c0_i32, %c0_i32_0 : i32, i32
  }
  func.func @transform_4(%arg0: i32) -> (i32, i32) {
    %c0_i32 = arith.constant 0 : i32
    %c0_i32_0 = arith.constant 0 : i32
    %c0_i32_1 = arith.constant 0 : i32
    return %c0_i32, %c0_i32_0 : i32, i32
  }
  func.func @transform_5(%arg0: i32) -> (i32, i32) {
    %c0_i32 = arith.constant 0 : i32
    %c0_i32_0 = arith.constant 0 : i32
    %c0_i32_1 = arith.constant 0 : i32
    return %c0_i32, %c0_i32_0 : i32, i32
  }
  func.func @transform_6(%arg0: i32) -> (i32, i32) {
    %c0_i32 = arith.constant 0 : i32
    %c0_i32_0 = arith.constant 0 : i32
    %c0_i32_1 = arith.constant 0 : i32
    return %c0_i32, %c0_i32_0 : i32, i32
  }
  func.func @transform_7(%arg0: i32) -> (i32, i32) {
    %c0_i32 = arith.constant 0 : i32
    %c0_i32_0 = arith.constant 0 : i32
    return %arg0, %c0_i32 : i32, i32
  }
}

</mosaic_0001>

<bundles_post_ra>
// kernel: mlp2_forward.1
= control target key start
LH: loop header
LB: loop body
LE: loop exit
PB: predicated region body
PF: predicated region fallthrough
CT: control target
= control target key end

     0   :  { %vm54_vm0 = vcmask 1042432   ;;  %vm55_vm1 = vcmask 1043456   ;;  %v739_v1 = vmov 65535   ;;  %vm50_vm2 = vcmask 56320   ;;  %s925_s1 = inlined_call_operand.vmem [shape: bf16[7,512], index: 1, kind: input, shape index: {}]   ;;  %s926_s3 = inlined_call_operand.vmem [shape: bf16[512,128], index: 3, kind: input, shape index: {}]   ;;  %s927_s0 = inlined_call_operand.vmem [shape: bf16[8,7], index: 0, kind: input, shape index: {}]   ;;  %s928_s4 = inlined_call_operand.vmem [shape: f32[1,128], index: 4, kind: input, shape index: {}]   ;;  %s929_s5 = inlined_call_operand.vmem [shape: bf16[128,32], index: 5, kind: input, shape index: {}]   ;;  %s930_s2 = inlined_call_operand.vmem [shape: f32[1,512], index: 2, kind: input, shape index: {}]   ;;  %s931_s6 = inlined_call_operand.vmem [shape: f32[1,32], index: 6, kind: input, shape index: {}]   ;;  %s932_s7 = inlined_call_operand.vmem [shape: bf16[8,32], index: 7, kind: output, shape index: {}]  }
   0x1   :  { %v28_v0 = vld [vmem:[%s925_s1] sm:$0xff]  ;;  %v56_v2 = vsel %vm54_vm0, 4294967295, %v739_v1  ;;  %v29_v3 = vld [vmem:[%s925_s1 + $0x8] sm:$0xff]  ;;  %v703_v7 = vld [vmem:[%s926_s3 + $0x38] sm:$0xff]  ;;  %vm526_vm3 = vcmask 257024  }
   0x2   :  { %v42_v4 = vunpack.c.l.b16 %v28_v0  ;;  %v44_v5 = vunpack.c.l.b16 %v29_v3  ;;  %v45_v6 = vunpack.c.h.b16 %v29_v3  ;;  %v57_v8 = vsel %vm55_vm1, %v56_v2, 0  ;;  %390 = vmatpush.bf16.msra.mxu0 %v703_v7  ;;  %v702_v17 = vld [vmem:[%s926_s3 + $0x30] sm:$0xff]  ;;  %v719_v18 = vld [vmem:[%s926_s3 + $0xb8] sm:$0xff]  ;;  %v27_v20 = vld [vmem:[%s927_s0] sm:$0xf] }
   0x3   :  { %v43_v9 = vunpack.c.h.b16 %v28_v0  ;;  %v711_v21 = vld [vmem:[%s926_s3 + $0x78] sm:$0xff]  ;;  %v701_v23 = vld [vmem:[%s926_s3 + $0x28] sm:$0xff]  ;;  %v718_v24 = vld [vmem:[%s926_s3 + $0xb0] sm:$0xff] }
   0x4   :  { %v46_v10 = vpack.c.b16 %v42_v4, %v42_v4  ;;  %v48_v11 = vpack.c.b16 %v44_v5, %v44_v5  ;;  %v49_v12 = vpack.c.b16 %v45_v6, %v45_v6  ;;  %v727_v22 = vld [vmem:[%s926_s3 + $0xf8] sm:$0xff]  ;;  %v710_v25 = vld [vmem:[%s926_s3 + $0x70] sm:$0xff]  ;;  %v700_v27 = vld [vmem:[%s926_s3 + $0x20] sm:$0xff] }
   0x5   :  { %v47_v13 = vpack.c.b16 %v43_v9, %v43_v9  ;;  %v726_v26 = vld [vmem:[%s926_s3 + $0xf0] sm:$0xff]  ;;  %v717_v28 = vld [vmem:[%s926_s3 + $0xa8] sm:$0xff]  ;;  %v699_v30 = vld [vmem:[%s926_s3 + $0x18] sm:$0xff] }
   0x6   :  { %v59_v14 = vand.u32 %v57_v8, %v46_v10  ;;  %v65_v15 = vand.u32 %v57_v8, %v48_v11  ;;  %v68_v16 = vand.u32 %v57_v8, %v49_v12  ;;  %391 = vmatpush.bf16.msra.mxu0 %v702_v17  ;;  %v725_v29 = vld [vmem:[%s926_s3 + $0xe8] sm:$0xff]  ;;  %v716_v31 = vld [vmem:[%s926_s3 + $0xa0] sm:$0xff]  ;;  %v698_v33 = vld [vmem:[%s926_s3 + $0x10] sm:$0xff] }
   0x7   :  { %v62_v19 = vand.u32 %v57_v8, %v47_v13  ;;  %v724_v32 = vld [vmem:[%s926_s3 + $0xe0] sm:$0xff]  ;;  %v715_v34 = vld [vmem:[%s926_s3 + $0x98] sm:$0xff]  ;;  %v697_v36 = vld [vmem:[%s926_s3 + $0x8] sm:$0xff] }
   0x8   :  { %77 = vmatpush.bf16.msra.mxu1 %v59_v14  ;;  %103 = vmatpush.bf16.msra.mxu2 %v65_v15  ;;  %v723_v35 = vld [vmem:[%s926_s3 + $0xd8] sm:$0xff]  ;;  %v709_v37 = vld [vmem:[%s926_s3 + $0x68] sm:$0xff]  ;;  %v714_v38 = vld [vmem:[%s926_s3 + $0x90] sm:$0xff] }
   0x9   :  { %116 = vmatpush.bf16.msra.mxu3 %v68_v16  ;;  %v722_v39 = vld [vmem:[%s926_s3 + $0xd0] sm:$0xff]  ;;  %v696_v40 = vld [vmem:[%s926_s3] sm:$0xff]  ;;  %v713_v42 = vld [vmem:[%s926_s3 + $0x88] sm:$0xff] }
   0xa   :  { %392 = vmatpush.bf16.msra.mxu0 %v701_v23  ;;  %v708_v41 = vld [vmem:[%s926_s3 + $0x60] sm:$0xff]  ;;  %v721_v43 = vld [vmem:[%s926_s3 + $0xc8] sm:$0xff]  ;;  %v707_v44 = vld [vmem:[%s926_s3 + $0x58] sm:$0xff] }
   0xb   :  { %532 = vmatmul.msk.bf16.vlgmr.msra.gmra.mxu1 %vm50_vm2, %v27_v20  ;;  %534 = vmatmul.msk.bf16.vlgmr.msra.gmra.mxu2 %vm50_vm2, %v27_v20  ;;  %v712_v45 = vld [vmem:[%s926_s3 + $0x80] sm:$0xff]  ;;  %v706_v47 = vld [vmem:[%s926_s3 + $0x50] sm:$0xff]  ;;  %v705_v48 = vld [vmem:[%s926_s3 + $0x48] sm:$0xff] }
   0xc   :  { %90 = vmatpush.bf16.msrb.mxu1 %v62_v19  ;;  %416 = vmatpush.bf16.msrb.mxu2 %v719_v18  ;;  %v720_v46 = vld [vmem:[%s926_s3 + $0xc0] sm:$0xff]  ;;  %v735_v50 = vld [vmem:[%s929_s5 + $0x38] sm:$0xff]  ;;  %v734_v12 = vld [vmem:[%s929_s5 + $0x30] sm:$0xff] }
   0xd   :  { %535 = vmatmul.msk.bf16.vlgmr.msra.gmra.mxu3 %vm50_vm2, %v27_v20  ;;  %v704_v49 = vld [vmem:[%s926_s3 + $0x40] sm:$0xff]  ;;  %v733_v13 = vld [vmem:[%s929_s5 + $0x28] sm:$0xff]  ;;  %v731_v15 = vld [vmem:[%s929_s5 + $0x18] sm:$0xff] }
   0xe   :  { %429 = vmatpush.bf16.msrb.mxu3 %v727_v22  ;;  %393 = vmatpush.bf16.msra.mxu0 %v700_v27  ;;  %v30_v51 = vld [vmem:[%s930_s2] sm:$0xf]  ;;  %v730_v16 = vld [vmem:[%s929_s5 + $0x10] sm:$0xff]  ;;  %v729_v17 = vld [vmem:[%s929_s5 + $0x8] sm:$0xff] }
   0xf   :  { %v32_v52 = vperm.slane %v30_v51, 0  ;;  %v34_v56 = vperm.slane %v30_v51, 2  ;;  %v35_v57 = vperm.slane %v30_v51, 3  ;;  %v33_v4 = vperm.slane %v30_v51, 1  ;;  %v732_v14 = vld [vmem:[%s929_s5 + $0x20] sm:$0xff] }
  0x10   :  { %403 = vmatpush.bf16.msra.mxu1 %v711_v21  ;;  %417 = vmatpush.bf16.msrb.mxu2 %v718_v24  ;;  %v728_v18 = vld [vmem:[%s929_s5] sm:$0xff] }
  0x11   :  { %v737_v21 = vld [vmem:[%s928_s4] ss:$0 sm:$0xff] }
  0x12   :  { %430 = vmatpush.bf16.msrb.mxu3 %v726_v26  ;;  %394 = vmatpush.bf16.msra.mxu0 %v699_v30 }
  0x14   :  { %404 = vmatpush.bf16.msra.mxu1 %v710_v25  ;;  %418 = vmatpush.bf16.msrb.mxu2 %v717_v28 }
  0x16   :  { %431 = vmatpush.bf16.msrb.mxu3 %v725_v29  ;;  %395 = vmatpush.bf16.msra.mxu0 %v698_v33 }
  0x18   :  { %419 = vmatpush.bf16.msrb.mxu2 %v716_v31  ;;  %405 = vmatpush.bf16.msra.mxu1 %v709_v37 }
  0x1a   :  { %432 = vmatpush.bf16.msrb.mxu3 %v724_v32  ;;  %396 = vmatpush.bf16.msra.mxu0 %v697_v36 }
  0x1b   :  { %533 = vmatmul.msk.bf16.vlgmr.msrb.gmra.mxu1 %vm50_vm2, %v27_v20 }
  0x1c   :  { %420 = vmatpush.bf16.msrb.mxu2 %v715_v34  ;;  %406 = vmatpush.bf16.msra.mxu1 %v708_v41  ;;  %v738_v34 = vld [vmem:[%s931_s6] ss:$0 sm:$0xff] }
  0x1e   :  { %433 = vmatpush.bf16.msrb.mxu3 %v723_v35  ;;  %397 = vmatpush.bf16.msra.mxu0 %v696_v40 }
  0x20   :  { %421 = vmatpush.bf16.msrb.mxu2 %v714_v38  ;;  %407 = vmatpush.bf16.msra.mxu1 %v707_v44 }
  0x22   :  { %434 = vmatpush.bf16.msrb.mxu3 %v722_v39  ;;  %512 = vmatpush.bf16.msrb.mxu0 %v735_v50 }
  0x24   :  { %422 = vmatpush.bf16.msrb.mxu2 %v713_v42  ;;  %408 = vmatpush.bf16.msra.mxu1 %v706_v47 }
  0x26   :  { %435 = vmatpush.bf16.msrb.mxu3 %v721_v43  ;;  %513 = vmatpush.bf16.msrb.mxu0 %v734_v12 }
  0x28   :  { %423 = vmatpush.bf16.msrb.mxu2 %v712_v45  ;;  %409 = vmatpush.bf16.msra.mxu1 %v705_v48 }
  0x2a   :  { %436 = vmatpush.bf16.msrb.mxu3 %v720_v46  ;;  %514 = vmatpush.bf16.msrb.mxu0 %v733_v13 }
  0x2c   :  { %410 = vmatpush.bf16.msra.mxu1 %v704_v49 }
  0x2e   :  { %515 = vmatpush.bf16.msrb.mxu0 %v732_v14 }
  0x32   :  { %516 = vmatpush.bf16.msrb.mxu0 %v731_v15 }
  0x36   :  { %517 = vmatpush.bf16.msrb.mxu0 %v730_v16 }
  0x3a   :  { %518 = vmatpush.bf16.msrb.mxu0 %v729_v17 }
  0x3e   :  { %519 = vmatpush.bf16.msrb.mxu0 %v728_v18 }
  0x88   :  { %v79_v53 = vpop.f32.mrf.mxu1 }
  0x89   :  { %v80_v54 = vadd.f32 %v79_v53, %v32_v52 }
  0x8b   :  { %v122_v55 = vmax.f32 %v80_v54, 0.0 }
  0x8d   :  { %v126_v58 = vpack.c.bf16 %v122_v55, %v122_v55 }
  0x8e   :  { %v105_v59 = vpop.f32.mrf.mxu2 }
  0x8f   :  { %v106_v60 = vadd.f32 %v105_v59, %v34_v56  ;;  %398 = vmatmul.bf16.vlgmr.msra.gmra.mxu0 %v126_v58 }
  0x90   :  { %v118_v61 = vpop.f32.mrf.mxu3  ;;  %v81_v63 = vpop.f32.mrf.mxu1 }
  0x91   :  { %v119_v62 = vadd.f32 %v118_v61, %v35_v57  ;;  %v124_v0 = vmax.f32 %v106_v60, 0.0 }
  0x93   :  { %v125_v1 = vmax.f32 %v119_v62, 0.0  ;;  %v128_v2 = vpack.c.bf16 %v124_v0, %v124_v0 }
  0x95   :  { %v129_v3 = vpack.c.bf16 %v125_v1, %v125_v1  ;;  %424 = vmatmul.bf16.vlgmr.msrb.gmra.mxu2 %v128_v2 }
  0x96   :  { %v107_v5 = vpop.f32.mrf.mxu2 }
  0x97   :  { %437 = vmatmul.bf16.vlgmr.msrb.gmra.mxu3 %v129_v3 }
  0x98   :  { %v120_v6 = vpop.f32.mrf.mxu3  ;;  %v92_v7 = vpop.f32.mrf.mxu1 }
  0x99   :  { %v93_v8 = vadd.f32 %v92_v7, %v33_v4 }
  0x9b   :  { %v123_v9 = vmax.f32 %v93_v8, 0.0 }
  0x9d   :  { %v127_v10 = vpack.c.bf16 %v123_v9, %v123_v9 }
  0x9f   :  { %411 = vmatmul.bf16.vlgmr.msra.gmra.mxu1 %v127_v10 }
  0xa0   :  { %v94_v11 = vpop.f32.mrf.mxu1 }
 0x10c   :  { %v399_v19 = vpop.f32.mrf.mxu0 }
 0x10d   :  { %v400_v24 = vadd.f32 %v737_v21, %v399_v19 }
 0x114   :  { %v401_v20 = vpop.f32.mrf.mxu0 }
 0x118   :  { %v425_v22 = vpop.f32.mrf.mxu2 }
 0x11a   :  { %v438_v23 = vpop.f32.mrf.mxu3 }
 0x11c   :  { %v412_v25 = vpop.f32.mrf.mxu1 }
 0x11d   :  { %v413_v26 = vadd.f32 %v412_v25, %v400_v24 }
 0x11f   :  { %v426_v27 = vadd.f32 %v425_v22, %v413_v26 }
 0x120   :  { %v427_v28 = vpop.f32.mrf.mxu2 }
 0x121   :  { %v439_v29 = vadd.f32 %v438_v23, %v426_v27 }
 0x122   :  { %v440_v30 = vpop.f32.mrf.mxu3 }
 0x123   :  { %v442_v31 = vmax.f32 %v439_v29, 0.0 }
 0x124   :  { %v414_v32 = vpop.f32.mrf.mxu1 }
 0x125   :  { %v443_v33 = vpack.c.bf16 %v442_v31, %v442_v31 }
 0x127   :  { %520 = vmatmul.bf16.vlgmr.msrb.gmra.mxu0 %v443_v33 }
 0x1a4   :  { %v521_v35 = vpop.f32.mrf.mxu0 }
 0x1a5   :  { %v522_v36 = vadd.f32 %v738_v34, %v521_v35 }
 0x1a7   :  { %v525_v37 = vpack.c.bf16 %v522_v36, %v522_v36 }
 0x1a9   :  { %527 = vst.msk [vmem:[%s932_s7] sm:$0xf] %vm526_vm3, %v525_v37 }
 0x1ac   :  { %v523_v38 = vpop.f32.mrf.mxu0 }

</bundles_post_ra>
